<compile_context>
chip_gen: v6e
topology: v6e:2x2x1
jax: 0.10.0
libtpu: 0.0.40
codegen_flags: <defaults>
</compile_context>

<pallas_src>
import functools

import jax
import jax.numpy as jnp
from jax.experimental import pallas as pl
from jax.experimental.pallas import tpu as pltpu


def _round_up(x, m):
    return (x + m - 1) // m * m


def _choose_tiling(S, M, C, itemsize, vmem_budget_bytes, ts_cap):
    """Pick (TS, Sp): lane-dense spatial tile and padded spatial length.

    Prefers padding only to a multiple of 128 with TS a divisor of Sp (no extra
    pad / output-slice traffic).  Falls back to padding up to a VMEM-sized tile
    only when S's 128-divisor structure would force a tiny tile.
    """
    Sp128 = _round_up(S, 128)
    # Rough per-lane VMEM bytes of one kernel-1 grid step: double-buffered x
    # input + gate output, plus f32 hc / town / sigmoid intermediates.
    per_lane = 2 * M * itemsize + 2 * C * itemsize + (M + 3 * C) * 4
    ts_limit = max(128, vmem_budget_bytes // per_lane // 128 * 128)
    ts_limit = min(ts_limit, ts_cap, Sp128)
    q = Sp128 // 128
    best = max(d for d in range(1, q + 1) if q % d == 0 and d * 128 <= ts_limit)
    TS = best * 128
    if TS * 4 < ts_limit:            # divisor-constrained; pad a little further instead
        TS = ts_limit
        return TS, _round_up(S, TS)
    return TS, Sp128


# ---------------------------------------------------------------------------
# Kernel 1: fused pointwise convs + gate + feature accumulation over S tiles.
# ---------------------------------------------------------------------------
def _conv_gate_feature_kernel(x_ref, whc_ref, bhc_ref, wt_ref, bt_ref,
                              gate_ref, feat_ref, *, M, S, TS, Sp, n_split):
    p = pl.program_id(0)          # S-reduction split (dual-TC helper), usually size 1
    s = pl.program_id(2)          # local S-tile index (reduction axis, "arbitrary")

    @pl.when(s == 0)
    def _():
        feat_ref[...] = jnp.zeros_like(feat_ref)

    xt = x_ref[0]                                            # (M, TS), native dtype

    # hidden_conv + class_conv fused into one MXU matmul against the stacked
    # (M+C, M) weight; LeakyReLU(0.01) applied to both halves at once.
    hc = jnp.dot(whc_ref[...], xt, preferred_element_type=jnp.float32) + bhc_ref[...]
    hc = jnp.where(hc > 0, hc, 0.01 * hc)                    # (M+C, TS)
    h = hc[:M]                                               # (M, TS)  x_hidden
    c = hc[M:]                                               # (C, TS)  x_class

    # town (1x1 Conv1d) + sigmoid -> attention gate (module output x_class).
    t = jnp.dot(wt_ref[...], c, preferred_element_type=jnp.float32) + bt_ref[...]
    gate_ref[0] = jax.nn.sigmoid(t).astype(gate_ref.dtype)   # (C, TS), lane-dense store

    def _accumulate(cls):
        # feature += x_class @ x_hidden^T  (lane-axis contraction; the operand
        # transpose Mosaic inserts runs on the otherwise-idle XLU slots).
        feat_ref[0, 0] = feat_ref[0, 0] + jax.lax.dot_general(
            cls, h, (((1,), (1,)), ((), ())),
            preferred_element_type=jnp.float32)

    if Sp == S:
        _accumulate(c)
    else:
        # Only the last global S tile contains padded lanes -> mask only there.
        is_tail = (p == n_split - 1) & (s == pl.num_programs(2) - 1)

        @pl.when(is_tail)
        def _():
            lane = jax.lax.broadcasted_iota(jnp.int32, (1, TS), 1) + (Sp - TS)
            _accumulate(jnp.where(lane < S, c, 0.0))

        @pl.when(jnp.logical_not(is_tail))
        def _():
            _accumulate(c)


# ---------------------------------------------------------------------------
# Kernel 2: x_attn tile = feature^T (M, C) @ gate tile (C, TS)
# ---------------------------------------------------------------------------
def _attention_kernel(featT_ref, gate_ref, attn_ref):
    attn_ref[0] = jnp.dot(
        featT_ref[0], gate_ref[0].astype(jnp.float32),
        preferred_element_type=jnp.float32).astype(attn_ref.dtype)


# ---------------------------------------------------------------------------
# Wrapper
# ---------------------------------------------------------------------------
def gba_forward(x, params, *, C, vmem_budget_bytes=40 << 20, ts_cap=32768):
    """x: (B, M, W, H, D) -> (x_attention (B,M,W,H,D), x_class (B,C,W,H,D))."""
    Wh, bh, Wc, bc, Wt, bt, lw = params
    B, M, W, H, D = x.shape
    S = W * H * D
    ix = x.dtype.itemsize

    TS, Sp = _choose_tiling(S, M, C, ix, vmem_budget_bytes, ts_cap)
    n_s = Sp // TS

    x3 = x.reshape(B, M, S)
    if Sp != S:
        x3 = jnp.pad(x3, ((0, 0), (0, 0), (0, Sp - S)))

    # With B==1 on a dual-TC chip (v7x), split the S reduction across a leading
    # parallel axis so both cores work; partial (C, M) features summed in JAX.
    n_split = 2 if (B == 1 and n_s >= 2 and n_s % 2 == 0) else 1
    n_s_loc = n_s // n_split

    # Stack hidden_conv / class_conv weights: kernel 1 runs one MXU matmul per
    # tile for both convs (M % 8 == 0 keeps the h/c slices sublane-aligned).
    Whc = jnp.concatenate([Wh, Wc], axis=0).astype(jnp.float32)   # (M+C, M)
    bhc = jnp.concatenate([bh, bc], axis=0).astype(jnp.float32)   # (M+C, 1)

    vmem_limit = 48 << 20   # raises v5e/v6e scoped defaults, stays below v7x 64 MiB

    kernel1 = functools.partial(_conv_gate_feature_kernel,
                                M=M, S=S, TS=TS, Sp=Sp, n_split=n_split)
    gate_p, feat_parts = pl.pallas_call(
        kernel1,
        out_shape=(jax.ShapeDtypeStruct((B, C, Sp), x.dtype),
                   jax.ShapeDtypeStruct((n_split, B, C, M), jnp.float32)),
        grid_spec=pltpu.PrefetchScalarGridSpec(
            num_scalar_prefetch=0,
            grid=(n_split, B, n_s_loc),
            in_specs=[
                pl.BlockSpec((1, M, TS), lambda p, b, s: (b, 0, p * n_s_loc + s)),
                pl.BlockSpec((M + C, M), lambda p, b, s: (0, 0)),   # stacked conv W
                pl.BlockSpec((M + C, 1), lambda p, b, s: (0, 0)),   # stacked conv b
                pl.BlockSpec((C, C), lambda p, b, s: (0, 0)),       # town W
                pl.BlockSpec((C, 1), lambda p, b, s: (0, 0)),       # town b
            ],
            out_specs=(
                pl.BlockSpec((1, C, TS), lambda p, b, s: (b, 0, p * n_s_loc + s)),
                pl.BlockSpec((1, 1, C, M), lambda p, b, s: (p, b, 0, 0)),  # resident acc
            ),
        ),
        compiler_params=pltpu.CompilerParams(
            dimension_semantics=("parallel", "parallel", "arbitrary"),
            vmem_limit_bytes=vmem_limit),
        cost_estimate=pl.CostEstimate(
            flops=2 * B * Sp * ((M + C) * M + C * C + C * M),
            transcendentals=B * C * Sp,
            bytes_accessed=(B * M * Sp * ix + B * C * Sp * ix
                            + n_split * B * C * M * 4
                            + ((M + C) * (M + 1) + C * (C + 1)) * 4)),
    )(x3, Whc, bhc, Wt, bt)

    feature = jnp.sum(feat_parts, axis=0)                          # (B, C, M)

    # Tiny GCN (O(C^2*M + C*M^2) flops per batch) hoisted out of the kernel.
    A = (jnp.eye(C, dtype=jnp.float32)
         + jnp.eye(C, k=1, dtype=jnp.float32)
         + jnp.eye(C, k=-1, dtype=jnp.float32))
    for i in range(2):
        gcn = jnp.einsum("cd,bdm->bcm", A, feature, precision="highest")
        gcn = jnp.einsum("bcm,mn->bcn", gcn, lw[i], precision="highest")
        feature = jnp.einsum("cd,bdm->bcm", A, gcn, precision="highest")
    featT = jnp.swapaxes(feature, 1, 2).astype(jnp.float32)        # (B, M, C)

    attn_p = pl.pallas_call(
        _attention_kernel,
        out_shape=jax.ShapeDtypeStruct((B, M, Sp), x.dtype),
        grid_spec=pltpu.PrefetchScalarGridSpec(
            num_scalar_prefetch=0,
            grid=(B, n_s),
            in_specs=[
                pl.BlockSpec((1, M, C), lambda b, s: (b, 0, 0)),    # feature^T
                pl.BlockSpec((1, C, TS), lambda b, s: (b, 0, s)),   # gate tile
            ],
            out_specs=pl.BlockSpec((1, M, TS), lambda b, s: (b, 0, s)),
        ),
        compiler_params=pltpu.CompilerParams(
            dimension_semantics=("parallel", "parallel"),
            vmem_limit_bytes=vmem_limit),
        cost_estimate=pl.CostEstimate(
            flops=2 * B * M * C * Sp,
            transcendentals=0,
            bytes_accessed=B * C * Sp * ix + B * M * Sp * ix + B * M * C * 4),
    )(featT, gate_p)

    if Sp != S:
        attn_p = attn_p[:, :, :S]
        gate_p = gate_p[:, :, :S]
    x_attention = attn_p.reshape(B, M, W, H, D)
    x_class = gate_p.reshape(B, C, W, H, D)
    return x_attention, x_class


# ---------------------------------------------------------------------------
# Pure-JAX reference (same pointwise-conv approximation) for verification.
# ---------------------------------------------------------------------------
def gba_reference(x, params, *, C):
    Wh, bh, Wc, bc, Wt, bt, lw = params
    B, M, W, H, D = x.shape
    S = W * H * D
    x3 = x.reshape(B, M, S).astype(jnp.float32)

    hp = jnp.einsum("om,bms->bos", Wh, x3, precision="highest") + bh[None]
    h = jnp.where(hp > 0, hp, 0.01 * hp)                           # (B,M,S)
    cp = jnp.einsum("cm,bms->bcs", Wc, x3, precision="highest") + bc[None]
    c = jnp.where(cp > 0, cp, 0.01 * cp)                           # (B,C,S)

    feature = jnp.einsum("bcs,bms->bcm", c, h, precision="highest")  # (B,C,M)
    A = (jnp.eye(C, dtype=jnp.float32)
         + jnp.eye(C, k=1, dtype=jnp.float32)
         + jnp.eye(C, k=-1, dtype=jnp.float32))
    for i in range(2):
        gcn = jnp.einsum("cd,bdm->bcm", A, feature, precision="highest")
        gcn = jnp.einsum("bcm,mn->bcn", gcn, lw[i], precision="highest")
        feature = jnp.einsum("cd,bdm->bcm", A, gcn, precision="highest")
    featT = jnp.swapaxes(feature, 1, 2)                            # (B,M,C)

    gate = jax.nn.sigmoid(
        jnp.einsum("dc,bcs->bds", Wt, c, precision="highest") + bt[None])
    attn = jnp.einsum("bmc,bcs->bms", featT, gate, precision="highest")
    return attn.reshape(B, M, W, H, D), gate.reshape(B, C, W, H, D)


def init_params(key, M, C):
    """Deterministic init (PyTorch-like uniform for convs, randn for learnable_weight)."""
    ks = jax.random.split(key, 7)
    bm = 1.0 / (M ** 0.5)
    bcn = 1.0 / (C ** 0.5)
    Wh = jax.random.uniform(ks[0], (M, M), jnp.float32, -bm, bm)
    bh = jax.random.uniform(ks[1], (M, 1), jnp.float32, -bm, bm)
    Wc = jax.random.uniform(ks[2], (C, M), jnp.float32, -bm, bm)
    bc = jax.random.uniform(ks[3], (C, 1), jnp.float32, -bm, bm)
    Wt = jax.random.uniform(ks[4], (C, C), jnp.float32, -bcn, bcn)
    bt = jax.random.uniform(ks[5], (C, 1), jnp.float32, -bcn, bcn)
    lw = jax.random.normal(ks[6], (2, M, M), jnp.float32)
    return Wh, bh, Wc, bc, Wt, bt, lw


def _check(x, params, C, **kw):
    attn, cls = gba_forward(x, params, C=C, **kw)
    attn = jax.block_until_ready(attn)
    cls = jax.block_until_ready(cls)
    attn_ref, cls_ref = gba_reference(x, params, C=C)
    assert attn.shape == attn_ref.shape and cls.shape == cls_ref.shape
    rel = float(jnp.max(jnp.abs(attn - attn_ref)) /
                (jnp.max(jnp.abs(attn_ref)) + 1e-6))
    assert rel < 2e-3, f"x_attention mismatch vs reference: rel_err={rel}"
    assert jnp.allclose(cls, cls_ref, atol=1e-4, rtol=1e-4), "x_class mismatch vs reference"


if __name__ == "__main__":
    key = jax.random.PRNGKey(0)
    kx, kx2, kp = jax.random.split(key, 3)

    M, C = 8, 8
    params = init_params(kp, M, C)

    # Case 1: S multiple of 128 -> no padding, no output slices, single S tile.
    x1 = jax.random.normal(kx, (2, M, 8, 8, 8), jnp.float32)       # S = 512
    _check(x1, params, C)

    # Case 2: ragged S (pad+mask path), small ts_cap forces multi-tile reduction
    # and (B==1) the dual-TensorCore S-split path.
    x2 = jax.random.normal(kx2, (1, M, 10, 10, 10), jnp.float32)   # S = 1000
    _check(x2, params, C, ts_cap=256)

    print("KERNEL_OK")
</pallas_src>

<mosaic_0001>
module attributes {stable_mosaic.version = 11 : i64} {
  func.func @_conv_gate_feature_kernel(%arg0: i32, %arg1: i32, %arg2: i32, %arg3: memref<1x8x512xf32, #tpu.memory_space<vmem>>, %arg4: memref<16x8xf32, #tpu.memory_space<vmem>>, %arg5: memref<16x1xf32, #tpu.memory_space<vmem>>, %arg6: memref<8x8xf32, #tpu.memory_space<vmem>>, %arg7: memref<8x1xf32, #tpu.memory_space<vmem>>, %arg8: memref<1x8x512xf32, #tpu.memory_space<vmem>>, %arg9: memref<1x1x8x8xf32, #tpu.memory_space<vmem>>) attributes {dimension_semantics = [#tpu.dimension_semantics<parallel>, #tpu.dimension_semantics<parallel>, #tpu.dimension_semantics<arbitrary>], iteration_bounds = array<i64: 1, 2, 1>, scalar_prefetch = 0 : i64, scratch_operands = 0 : i64, tpu.core_type = #tpu.core_type<tc>, window_params = [{transform_indices = @transform_0, window_bounds = array<i64: 1, 8, 512>}, {pipeline_mode = #tpu.pipeline_mode<synchronous>, transform_indices = @transform_1, window_bounds = array<i64: 16, 8>}, {pipeline_mode = #tpu.pipeline_mode<synchronous>, transform_indices = @transform_2, window_bounds = array<i64: 16, 1>}, {pipeline_mode = #tpu.pipeline_mode<synchronous>, transform_indices = @transform_3, window_bounds = array<i64: 8, 8>}, {pipeline_mode = #tpu.pipeline_mode<synchronous>, transform_indices = @transform_4, window_bounds = array<i64: 8, 1>}, {transform_indices = @transform_5, window_bounds = array<i64: 1, 8, 512>}, {transform_indices = @transform_6, window_bounds = array<i64: 1, 1, 8, 8>}]} {
    %c0_i32 = arith.constant 0 : i32
    %0 = arith.cmpi eq, %arg2, %c0_i32 : i32
    %1 = arith.extui %0 : i1 to i32
    %c0_i32_0 = arith.constant 0 : i32
    %2 = arith.cmpi ne, %1, %c0_i32_0 : i32
    scf.if %2 {
      %cst_27 = arith.constant 0.000000e+00 : f32
      %37 = vector.broadcast %cst_27 : f32 to vector<1x1x8x8xf32>
      %c0_28 = arith.constant 0 : index
      %c0_29 = arith.constant 0 : index
      %c0_30 = arith.constant 0 : index
      %c0_31 = arith.constant 0 : index
      %38 = vector.load %arg9[%c0_28, %c0_29, %c0_30, %c0_31] : memref<1x1x8x8xf32, #tpu.memory_space<vmem>>, vector<1x1x8x8xf32>
      tpu.vector_store %arg9[%c0_28, %c0_29, %c0_30, %c0_31], %37 {strides = array<i32>} : memref<1x1x8x8xf32, #tpu.memory_space<vmem>>, vector<1x1x8x8xf32>,
    } else {
    }
    %c0 = arith.constant 0 : index
    %c0_1 = arith.constant 0 : index
    %c0_2 = arith.constant 0 : index
    %3 = vector.load %arg3[%c0, %c0_1, %c0_2] : memref<1x8x512xf32, #tpu.memory_space<vmem>>, vector<1x8x512xf32>
    %4 = vector.shape_cast %3 : vector<1x8x512xf32> to vector<8x512xf32>
    %c0_3 = arith.constant 0 : index
    %c0_4 = arith.constant 0 : index
    %5 = vector.load %arg4[%c0_3, %c0_4] : memref<16x8xf32, #tpu.memory_space<vmem>>, vector<16x8xf32>
    %cst = arith.constant dense<0.000000e+00> : vector<16x512xf32>
    %6 = tpu.matmul %5, %4, %cst {dimension_numbers = #tpu.dot_dimension_numbers<[1], [0], [0], [1], [0, 0, 1, 1], [], []>} : vector<16x8xf32>, vector<8x512xf32>, vector<16x512xf32> -> vector<16x512xf32>
    %c0_5 = arith.constant 0 : index
    %c0_6 = arith.constant 0 : index
    %7 = vector.load %arg5[%c0_5, %c0_6] : memref<16x1xf32, #tpu.memory_space<vmem>>, vector<16x1xf32>
    %8 = vector.broadcast %7 : vector<16x1xf32> to vector<16x512xf32>
    %9 = arith.addf %6, %8 : vector<16x512xf32>
    %cst_7 = arith.constant 0.000000e+00 : f32
    %10 = vector.broadcast %cst_7 : f32 to vector<16x512xf32>
    %11 = arith.cmpf ogt, %9, %10 : vector<16x512xf32>
    %cst_8 = arith.constant 0.00999999977 : f32
    %12 = vector.broadcast %cst_8 : f32 to vector<16x512xf32>
    %13 = arith.mulf %12, %9 : vector<16x512xf32>
    %14 = arith.select %11, %9, %13 : vector<16x512xi1>, vector<16x512xf32>
    %15 = vector.extract_strided_slice %14 {offsets = [0, 0], sizes = [8, 512], strides = [1, 1]} : vector<16x512xf32> to vector<8x512xf32>
    %16 = vector.extract_strided_slice %14 {offsets = [8, 0], sizes = [8, 512], strides = [1, 1]} : vector<16x512xf32> to vector<8x512xf32>
    %c0_9 = arith.constant 0 : index
    %c0_10 = arith.constant 0 : index
    %17 = vector.load %arg6[%c0_9, %c0_10] : memref<8x8xf32, #tpu.memory_space<vmem>>, vector<8x8xf32>
    %cst_11 = arith.constant dense<0.000000e+00> : vector<8x512xf32>
    %18 = tpu.matmul %17, %16, %cst_11 {dimension_numbers = #tpu.dot_dimension_numbers<[1], [0], [0], [1], [0, 0, 1, 1], [], []>} : vector<8x8xf32>, vector<8x512xf32>, vector<8x512xf32> -> vector<8x512xf32>
    %c0_12 = arith.constant 0 : index
    %c0_13 = arith.constant 0 : index
    %19 = vector.load %arg7[%c0_12, %c0_13] : memref<8x1xf32, #tpu.memory_space<vmem>>, vector<8x1xf32>
    %20 = vector.broadcast %19 : vector<8x1xf32> to vector<8x512xf32>
    %21 = arith.addf %18, %20 : vector<8x512xf32>
    %22 = arith.negf %21 : vector<8x512xf32>
    %23 = math.exp %22 : vector<8x512xf32>
    %cst_14 = arith.constant 1.000000e+00 : f32
    %24 = vector.broadcast %cst_14 : f32 to vector<8x512xf32>
    %25 = arith.addf %24, %23 : vector<8x512xf32>
    %26 = arith.divf %24, %25 : vector<8x512xf32>
    %c0_15 = arith.constant 0 : index
    %c0_16 = arith.constant 0 : index
    %c0_17 = arith.constant 0 : index
    %27 = vector.load %arg8[%c0_15, %c0_16, %c0_17] : memref<1x8x512xf32, #tpu.memory_space<vmem>>, vector<1x8x512xf32>
    %28 = vector.shape_cast %27 : vector<1x8x512xf32> to vector<8x512xf32>
    %29 = vector.shape_cast %26 : vector<8x512xf32> to vector<1x8x512xf32>
    tpu.vector_store %arg8[%c0_15, %c0_16, %c0_17], %29 {strides = array<i32>} : memref<1x8x512xf32, #tpu.memory_space<vmem>>, vector<1x8x512xf32>,
    %c0_18 = arith.constant 0 : index
    %c0_19 = arith.constant 0 : index
    %c0_20 = arith.constant 0 : index
    %c0_21 = arith.constant 0 : index
    %30 = vector.load %arg9[%c0_18, %c0_19, %c0_20, %c0_21] : memref<1x1x8x8xf32, #tpu.memory_space<vmem>>, vector<1x1x8x8xf32>
    %31 = vector.shape_cast %30 : vector<1x1x8x8xf32> to vector<8x8xf32>
    %cst_22 = arith.constant dense<0.000000e+00> : vector<8x8xf32>
    %32 = tpu.matmul %16, %15, %cst_22 {dimension_numbers = #tpu.dot_dimension_numbers<[1], [1], [0], [0], [0, 0, 1, 0], [], []>} : vector<8x512xf32>, vector<8x512xf32>, vector<8x8xf32> -> vector<8x8xf32>
    %33 = arith.addf %31, %32 : vector<8x8xf32>
    %c0_23 = arith.constant 0 : index
    %c0_24 = arith.constant 0 : index
    %c0_25 = arith.constant 0 : index
    %c0_26 = arith.constant 0 : index
    %34 = vector.load %arg9[%c0_23, %c0_24, %c0_25, %c0_26] : memref<1x1x8x8xf32, #tpu.memory_space<vmem>>, vector<1x1x8x8xf32>
    %35 = vector.shape_cast %34 : vector<1x1x8x8xf32> to vector<8x8xf32>
    %36 = vector.shape_cast %33 : vector<8x8xf32> to vector<1x1x8x8xf32>
    tpu.vector_store %arg9[%c0_23, %c0_24, %c0_25, %c0_26], %36 {strides = array<i32>} : memref<1x1x8x8xf32, #tpu.memory_space<vmem>>, vector<1x1x8x8xf32>,
    return
  }
  func.func @transform_0(%arg0: i32, %arg1: i32, %arg2: i32) -> (i32, i32, i32) {
    %c1_i32 = arith.constant 1 : i32
    %0 = arith.muli %arg0, %c1_i32 : i32
    %1 = arith.addi %0, %arg2 : i32
    %c0_i32 = arith.constant 0 : i32
    %c0_i32_0 = arith.constant 0 : i32
    return %arg1, %c0_i32, %1 : i32, i32, i32
  }
  func.func @transform_1(%arg0: i32, %arg1: i32, %arg2: i32) -> (i32, i32) {
    %c0_i32 = arith.constant 0 : i32
    %c0_i32_0 = arith.constant 0 : i32
    %c0_i32_1 = arith.constant 0 : i32
    return %c0_i32, %c0_i32_0 : i32, i32
  }
  func.func @transform_2(%arg0: i32, %arg1: i32, %arg2: i32) -> (i32, i32) {
    %c0_i32 = arith.constant 0 : i32
    %c0_i32_0 = arith.constant 0 : i32
    %c0_i32_1 = arith.constant 0 : i32
    return %c0_i32, %c0_i32_0 : i32, i32
  }
  func.func @transform_3(%arg0: i32, %arg1: i32, %arg2: i32) -> (i32, i32) {
    %c0_i32 = arith.constant 0 : i32
    %c0_i32_0 = arith.constant 0 : i32
    %c0_i32_1 = arith.constant 0 : i32
    return %c0_i32, %c0_i32_0 : i32, i32
  }
  func.func @transform_4(%arg0: i32, %arg1: i32, %arg2: i32) -> (i32, i32) {
    %c0_i32 = arith.constant 0 : i32
    %c0_i32_0 = arith.constant 0 : i32
    %c0_i32_1 = arith.constant 0 : i32
    return %c0_i32, %c0_i32_0 : i32, i32
  }
  func.func @transform_5(%arg0: i32, %arg1: i32, %arg2: i32) -> (i32, i32, i32) {
    %c1_i32 = arith.constant 1 : i32
    %0 = arith.muli %arg0, %c1_i32 : i32
    %1 = arith.addi %0, %arg2 : i32
    %c0_i32 = arith.constant 0 : i32
    %c0_i32_0 = arith.constant 0 : i32
    return %arg1, %c0_i32, %1 : i32, i32, i32
  }
  func.func @transform_6(%arg0: i32, %arg1: i32, %arg2: i32) -> (i32, i32, i32, i32) {
    %c0_i32 = arith.constant 0 : i32
    %c0_i32_0 = arith.constant 0 : i32
    %c0_i32_1 = arith.constant 0 : i32
    return %arg0, %arg1, %c0_i32, %c0_i32_0 : i32, i32, i32, i32
  }
}

</mosaic_0001>

<bundles_post_ra>
// kernel: tpu_custom_call.1
= control target key start
LH: loop header
LB: loop body
LE: loop exit
PB: predicated region body
PF: predicated region fallthrough
CT: control target
= control target key end

     0   :  { %12 = vsyncpa [#allocation3], 0  ;;  %s1514_s0 = inlined_call_operand.hbm [shape: f32[2,8,512], index: 0, kind: input, shape index: {}]   ;;  %s1515_s1 = inlined_call_operand.vmem [shape: f32[16,8], index: 1, kind: input, shape index: {}]   ;;  %s1516_s2 = inlined_call_operand.vmem [shape: f32[16,1], index: 2, kind: input, shape index: {}]   ;;  %s1517_s3 = inlined_call_operand.vmem [shape: f32[8,8], index: 3, kind: input, shape index: {}]   ;;  %s1518_s4 = inlined_call_operand.vmem [shape: f32[8,1], index: 4, kind: input, shape index: {}]   ;;  %s1519_s5 = inlined_call_operand.hbm [shape: f32[2,8,512], index: 5, kind: output, shape index: {0}]   ;;  %s1520_s6 = inlined_call_operand.hbm [shape: f32[1,2,8,8], index: 6, kind: output, shape index: {1}]  }
   0x1   :  { %14 = vsyncpa [#allocation3 + $0x1], 0 }
   0x2   :  { %15 = vsyncpa [#allocation4], 0 }
   0x3   :  { %17 = vsyncpa [#allocation4 + $0x1], 0 }
   0x4   :  { %18 = vsyncpa [#allocation7], 0 }
   0x5   :  { %20 = vsyncpa [#allocation7 + $0x1], 0  ;;  %s1305_s21 = smov 0   ;;  %s1307_s22 = smov 0  }
   0x6   :  { %s1309_s23 = smov 0   ;;  %s1311_s24 = smov 0  }
   0x7   :  { %s1313_s25 = smov 0   ;;  %s1315_s26 = smov 0  }
   0x8 LB: > { %s1008_s27 = sadd.s32 4294967295, %s1263_s26   ;;  %s1009_s28 = sadd.s32 4294967294, %s1263_s26   ;;  %s1263_s26 = sphi %s1315_s26, %s26_s26   ;;  %s1259_s25 = sphi %s1313_s25, %s1534_s25   ;;  %s1255_s24 = sphi %s1311_s24, %s1533_s24   ;;  %s1251_s23 = sphi %s1309_s23, %s1532_s23   ;;  %s1247_s22 = sphi %s1307_s22, %s1531_s22   ;;  %s1243_s21 = sphi %s1305_s21, %s1530_s21  }
   0x9   : > { %s41_s29 = sadd.s32 1, %s1259_s25  ;;  %s56_s30 = sadd.s32 1, %s1251_s23 }
   0xa   : > { %p43_p0 = scmp.ge.s32.totalorder %s41_s29, 2  ;;  %p63_p1 = scmp.ne.s32.totalorder %s1251_s23, %s1247_s22 }
   0xb   : > { %p64_p2 = scmp.eq.s32.totalorder %s1263_s26, 0  ;;  %p69_p3 = scmp.ne.s32.totalorder %s1247_s22, %s1243_s21 }
   0xc   : > { %s1536_s29 = smov (%p43_p0, %s41_s29), 0  ;;  %p70_p5 = scmp.eq.s32.totalorder %s1008_s27, 0 }
   0xd   : > { %p1346_p4 = por %p64_p2, %p63_p1  ;;  %s51_s8 = ssub.s32 %s1259_s25, %s1536_s29 }
   0xe   : > { %p181_p6 = scmp.eq.s32.totalorder %s1008_s27, 1  ;;  %p54_p7 = scmp.eq.s32.totalorder %s51_s8, 0 }
   0xf   : > { %p1352_p8 = por %p70_p5, %p69_p3  ;;  %p187_p10 = scmp.eq.s32.totalorder %s1009_s28, 1 }
  0x10   : > { %p1356_p9 = por %p181_p6, %p63_p1  ;;  %p1055_p13 = scmp.lt.s32.totalorder %s1263_s26, 2 }
  0x11   : > { %s1361_s11 = scalar_select %p54_p7, %s1251_s23, %s56_s30  }
  0x12   : > { %p1363_p11 = por %p187_p10, %p69_p3  ;;  %s247_s13 = sand.u32 1, %s1251_s23  }
  0x13   : > { %s1012_s14 = sshll.u32 %s247_s13, 5  ;;  %s1036_s15 = sshll.u32 %s1259_s25, 9 }
  0x14   : > { %s1525_s12 = scalar_select %p1363_p11, 1, 0 }
  0x15   : > { %s260_s18 = scalar_lea.hbm %s1514_s0, %s1036_s15  ;;  %s251_s19 = scalar_lea.vmem [#allocation2], %s1012_s14 }
  0x16   : > { %s262_s20 = sshll.u32 %s251_s19, 4  ;;  %p1376_p0 = pnand %p1055_p13, %p1346_p4  ;;  %s263_s20 = int_to_ptr.vmem [resolvable:$true] %s262_s20 }
  0x17   : > { %p1015_p1 = scmp.ge.s32.totalorder %s1263_s26, 1  ;;  %p267_p2 = scmp.lt.s32.totalorder %s1263_s26, 3 }
  0x18   : > { %s248_s28 = scalar_lea.sflag [#allocation3], %s247_s13  ;;  %p1127_p3 = pneg %p1376_p0 }
  0x19   : > { %s1138_s30 = scalar_lea.vmem %s263_s20, 512  ;;  %s1265_s8 = smov [#allocation2]  }
  0x1a   : > { %p1139_p5 = scmp.ne.s32.totalorder %s263_s20, %s1138_s30  ;;  %s1143_s15 = sshll.u32 %s1265_s8, 4  ;;  %s1144_s15 = int_to_ptr.vmem [resolvable:$false] %s1143_s15 }
  0x1b   : > { %s1145_s14 = scalar_lea.vmem %s1144_s15, 1024  ;;  %p1146_p10 = scmp.lt.s32.totalorder %s263_s20, %s1144_s15 }
  0x1c   : > { %p1141_p6 = pnand %p1139_p5, %p1127_p3  ;;  %p1147_p12 = scmp.lt.s32.totalorder %s1145_s14, %s1138_s30 }
  0x1e   : > { %p1142_p7 = pneg %p1141_p6  ;;  %p1148_p4 = por %p1147_p12, %p1146_p10 }
  0x20   : > { %p1149_p13 = pnand %p1148_p4, %p1142_p7 }
  0x22   : > { %1152 = shalt.err (!%p1149_p13)
}
  0x23   : > { %1047 = dma.hbm_to_vmem [thread:$0]  (!%p1376_p0), %s260_s18, 512, %s263_s20, %s248_s28  }
  0x24   : > { %p268_p11 = pnand %p1015_p1, %p267_p2 }
  0x25   : > { %s1391_s7 = sand.u32 (!%p268_p11), 1, %s1247_s22  }
  0x26   : > { %271 = sbr.rel (%p268_p11) target bundleno = 503 (0x1f7), region = 40  ;;  %s1521_s13 = sshll.u32 (!%p268_p11), %s1391_s7, 5 }
  0x27   : > { %s274_s16 = scalar_lea.sflag (!%p268_p11), [#allocation3], %s1391_s7  ;;  %s277_s17 = scalar_lea.vmem (!%p268_p11), [#allocation2], %s1521_s13 }
  0x2b   : > { %1230 = dma.done.wait (%p1352_p8), %s274_s16, 512  }
  0x2c   : > { %1232 = vsyncadd (%p1352_p8), %s274_s16, 4294966784  ;;  %v1266_v0 = vmov 0.0   ;;  %v1267_v1 = vmov 0   ;;  %v322_v2 = vld [vmem:[%s277_s17 + $0x8] sm:$0xff]  ;;  %v324_v3 = vld [vmem:[%s277_s17 + $0x18] sm:$0xff]  ;;  %vm319_vm0 = vcmask 64512  }
  0x2d   : > { %410 = vmatprep.mubr.f32.mxu0 %v1266_v0  ;;  %487 = vmatprep.mubr.f32.mxu1 %v1266_v0  ;;  %v321_v4 = vld [vmem:[%s277_s17] sm:$0xff]  ;;  %v323_v5 = vld [vmem:[%s277_s17 + $0x10] sm:$0xff]  ;;  %v328_v7 = vld [vmem:[%s1516_s2 + $0x8] sm:$0xff]  ;;  %s1018_s18 = sshll.u32 %s1391_s7, 3  ;;  %s1033_s9 = sshll.u32 %s1255_s24, 7 }
  0x2e   : > { %1107 = vset.pattern.permute.xlu0 %v1267_v1  ;;  %1108 = vset.pattern.permute.xlu1 %v1267_v1  ;;  %v325_v6 = vld [vmem:[%s1515_s1] sm:$0xff]  ;;  %v326_v8 = vld [vmem:[%s1515_s1 + $0x8] sm:$0xff]  ;;  %s1434_s19 = scalar_lea.vmem [#allocation6], %s1018_s18  ;;  %s883_s30 = scalar_lea.hbm %s1520_s6, %s1033_s9 }
  0x2f   : > { %376 = vmatprep.subr.mxu0 %v322_v2  ;;  %453 = vmatprep.subr.mxu1 %v324_v3  ;;  %v327_v9 = vld [vmem:[%s1516_s2] sm:$0xff]  ;;  %320 = vst.msk [vmem:[%s1434_s19] sm:$0xff] %vm319_vm0, %v1266_v0  ;;  %s885_s20 = sshll.u32 %s1434_s19, 4  ;;  %s853_s8 = scalar_lea.sflag [#allocation7], %s1391_s7  ;;  %s886_s20 = int_to_ptr.vmem [resolvable:$true] %s885_s20 }
  0x30   : > { %377 = vmatpush1.msra.mxu0 %v321_v4  ;;  %454 = vmatpush1.msra.mxu1 %v323_v5  ;;  %v525_v10 = vld [vmem:[%s1518_s4] sm:$0xff]  ;;  %s1153_s15 = scalar_lea.vmem %s886_s20, 128  ;;  %s1268_s14 = smov [#allocation6]  }
  0x31   : > { %1019 = vmatmul.mubr.msk.f32.vlgmr.msra.gmra.mxu0 %vm319_vm0, %v325_v6  ;;  %1021 = vmatmul.mubr.msk.f32.vlgmr.msra.gmra.mxu1 %vm319_vm0, %v325_v6  ;;  %v524_v38 = vld [vmem:[%s1517_s3] sm:$0xff]  ;;  %p1154_p8 = scmp.ne.s32.totalorder %s886_s20, %s1153_s15  ;;  %s1157_s16 = sshll.u32 %s1268_s14, 4  ;;  %s1158_s16 = int_to_ptr.vmem [resolvable:$false] %s1157_s16 }
  0x32   : > { %416 = vmatprep.mubr.f32.mxu0 %v1266_v0  ;;  %493 = vmatprep.mubr.f32.mxu1 %v1266_v0  ;;  %s1159_s17 = scalar_lea.vmem %s1158_s16, 256  ;;  %p1160_p0 = scmp.lt.s32.totalorder %s886_s20, %s1158_s16 }
  0x33   : > { %336 = vperm.xlu0 %1107, %v328_v7   ;;  %528 = vperm.xlu1 %1108, %v525_v10   ;;  %p1155_p11 = pnand %p1154_p8, %p1356_p9  ;;  %p1161_p1 = scmp.lt.s32.totalorder %s1159_s17, %s1153_s15 }
  0x35   : > { %1020 = vmatmul.mubr.msk.f32.gmra.mxu0 %vm319_vm0, %v326_v8  ;;  %1022 = vmatmul.mubr.msk.f32.gmra.mxu1 %vm319_vm0, %v326_v8  ;;  %p1156_p12 = pneg %p1155_p11  ;;  %p1162_p2 = por %p1161_p1, %p1160_p0 }
  0x36   : > { %598 = vmatprep.mubr.f32.mxu0 %v1266_v0  ;;  %669 = vmatprep.mubr.f32.mxu1 %v1266_v0  ;;  %v704_v60 = vld [vmem:[%s1434_s19] sm:$0xff] }
  0x37   : > { %331 = vperm.xlu0 %1107, %v327_v9   ;;  %p1163_p3 = pnand %p1162_p2, %p1156_p12 }
  0xae   : > { %v337_v11 = vpop.permute.xlu0 %336  ;;  %v529_v46 = vpop.permute.xlu1 %528 }
  0xb2   : > { %v332_v16 = vpop.permute.xlu0 %331 }
  0xf1   : > { %v412_v12 = vpop.f32.mrf.mxu0  ;;  %v489_v13 = vpop.f32.mrf.mxu1 }
  0xf2   : > { %v413_v23 = vadd.f32 %v412_v12, %v332_v16  ;;  %v490_v26 = vadd.f32 %v489_v13, %v332_v16 }
  0xf3   : > { %v414_v14 = vpop.f32.mrf.mxu0  ;;  %v491_v15 = vpop.f32.mrf.mxu1 }
  0xf4   : > { %v415_v24 = vadd.f32 %v414_v14, %v332_v16  ;;  %v492_v25 = vadd.f32 %v491_v15, %v332_v16  ;;  %v508_v33 = vmul.f32 0.01, %v413_v23  ;;  %vm500_vm7 = vcmp.gt.f32.partialorder %v413_v23, 0.0 }
  0xf5   : > { %v418_v17 = vpop.f32.mrf.mxu0  ;;  %v495_v18 = vpop.f32.mrf.mxu1  ;;  %v510_v39 = vmul.f32 0.01, %v490_v26  ;;  %vm502_vm8 = vcmp.gt.f32.partialorder %v490_v26, 0.0 }
  0xf6   : > { %v419_v19 = vadd.f32 %v418_v17, %v337_v11  ;;  %v496_v20 = vadd.f32 %v495_v18, %v337_v11  ;;  %v509_v34 = vmul.f32 0.01, %v415_v24  ;;  %v511_v35 = vmul.f32 0.01, %v492_v25 }
  0xf7   : > { %v420_v21 = vpop.f32.mrf.mxu0  ;;  %v497_v22 = vpop.f32.mrf.mxu1  ;;  %vm501_vm5 = vcmp.gt.f32.partialorder %v415_v24, 0.0  ;;  %vm503_vm6 = vcmp.gt.f32.partialorder %v492_v25, 0.0  ;;  %v516_v44 = vsel %vm500_vm7, %v413_v23, %v508_v33  ;;  %v518_v45 = vsel %vm502_vm8, %v490_v26, %v510_v39 }
  0xf8   : > { %v421_v27 = vadd.f32 %v420_v21, %v337_v11  ;;  %v498_v28 = vadd.f32 %v497_v22, %v337_v11  ;;  %vm504_vm1 = vcmp.gt.f32.partialorder %v419_v19, 0.0  ;;  %v512_v29 = vmul.f32 0.01, %v419_v19 }
  0xf9   : > { %vm506_vm2 = vcmp.gt.f32.partialorder %v496_v20, 0.0  ;;  %v514_v30 = vmul.f32 0.01, %v496_v20  ;;  %v517_v42 = vsel %vm501_vm5, %v415_v24, %v509_v34  ;;  %v519_v43 = vsel %vm503_vm6, %v492_v25, %v511_v35 }
  0xfa   : > { %v513_v31 = vmul.f32 0.01, %v421_v27  ;;  %v515_v32 = vmul.f32 0.01, %v498_v28  ;;  %vm505_vm3 = vcmp.gt.f32.partialorder %v421_v27, 0.0  ;;  %vm507_vm4 = vcmp.gt.f32.partialorder %v498_v28, 0.0 }
  0xfb   : > { %v520_v40 = vsel %vm504_vm1, %v419_v19, %v512_v29  ;;  %v522_v41 = vsel %vm506_vm2, %v496_v20, %v514_v30 }
  0xfc   : > { %v521_v36 = vsel %vm505_vm3, %v421_v27, %v513_v31  ;;  %v523_v37 = vsel %vm507_vm4, %v498_v28, %v515_v32 }
  0xfd   : > { %564 = vmatprep.subr.mxu0 %v521_v36  ;;  %635 = vmatprep.subr.mxu1 %v523_v37 }
  0xfe   : > { %565 = vmatpush1.msra.mxu0 %v520_v40  ;;  %636 = vmatpush1.msra.mxu1 %v522_v41 }
  0xff   : > { %1023 = vmatmul.mubr.msk.f32.vlgmr.msra.gmra.mxu0 %vm319_vm0, %v524_v38  ;;  %1024 = vmatmul.mubr.msk.f32.vlgmr.msra.gmra.mxu1 %vm319_vm0, %v524_v38 }
 0x100   : > { %735 = vmatprep.subr.mxu0 %v517_v42  ;;  %805 = vmatprep.subr.mxu1 %v519_v43 }
 0x101   : > { %736 = vmatpush1.xpose.msra.mxu0 %v516_v44  ;;  %769 = vmatprep.mubr.f32.mxu0 %v521_v36 }
 0x102   : > { %806 = vmatpush1.xpose.msra.mxu1 %v518_v45  ;;  %839 = vmatprep.mubr.f32.mxu1 %v523_v37 }
 0x104   : > { %770 = vmatmul.mubr.f32.vlgmr.msra.gmra.mxu0 %v520_v40 }
 0x105   : > { %840 = vmatmul.mubr.f32.vlgmr.msra.gmra.mxu1 %v522_v41 }
 0x1bf   : > { %v600_v47 = vpop.f32.mrf.mxu0  ;;  %v671_v48 = vpop.f32.mrf.mxu1 }
 0x1c0   : > { %v601_v49 = vadd.f32 %v600_v47, %v529_v46  ;;  %v672_v50 = vadd.f32 %v671_v48, %v529_v46 }
 0x1c1   : > { %v602_v51 = vpop.f32.mrf.mxu0  ;;  %v673_v52 = vpop.f32.mrf.mxu1 }
 0x1c2   : > { %v603_v53 = vadd.f32 %v602_v51, %v529_v46  ;;  %v674_v54 = vadd.f32 %v673_v52, %v529_v46  ;;  %v1025_v55 = vmul.f32 -1.442695, %v601_v49  ;;  %v1027_v56 = vmul.f32 -1.442695, %v672_v50 }
 0x1c4   : > { %v771_v57 = vpop.f32.mrf.mxu0  ;;  %1109 = vpow2.f32 %v1025_v55  ;;  %v1026_v58 = vmul.f32 -1.442695, %v603_v53  ;;  %v1028_v59 = vmul.f32 -1.442695, %v674_v54 }
 0x1c5   : > { %v841_v61 = vpop.f32.mrf.mxu1  ;;  %1111 = vpow2.f32 %v1027_v56 }
 0x1c6   : > { %v842_v62 = vadd.f32 %v841_v61, %v771_v57  ;;  %v773_v63 = vpop.f32.mrf.mxu0  ;;  %1113 = vpow2.f32 %v1026_v58 }
 0x1c7   : > { %v843_v0 = vpop.f32.mrf.mxu1  ;;  %1115 = vpow2.f32 %v1028_v59 }
 0x1c8   : > { %v845_v1 = vadd.f32 %v842_v62, %v704_v60 }
 0x1ca   : > { %846 = vst.msk [vmem:[%s1434_s19] sm:$0xff] %vm319_vm0, %v845_v1 }
 0x1cb   : > { %1166 = shalt.err (!%p1163_p3)
}
 0x1cc   : > { %s1167_s18 = scalar_lea.hbm %s883_s30, 128  ;;  %s1171_s27 = scalar_lea.hbm %s1520_s6, 256 }
 0x1cd   : > { %p1168_p5 = scmp.ne.s32.totalorder %s883_s30, %s1167_s18  ;;  %p1172_p10 = scmp.lt.s32.totalorder %s883_s30, %s1520_s6 }
 0x1ce   : > { %p1173_p4 = scmp.lt.s32.totalorder %s1171_s27, %s1167_s18 }
 0x1cf   : > { %p1169_p6 = pnand %p1168_p5, %p1356_p9 }
 0x1d0   : > { %p1174_p13 = por %p1173_p4, %p1172_p10 }
 0x1d1   : > { %p1170_p7 = pneg %p1169_p6 }
 0x1d3   : > { %p1175_p8 = pnand %p1174_p13, %p1170_p7 }
 0x1d5   : > { %1178 = shalt.err (!%p1175_p8)
}
 0x1d6   : > { %1041 = dma.vmem_to_hbm [thread:$0]  (%p1356_p9), %s886_s20, 128, %s883_s30, %s853_s8   ;;  %v1110_v2 = vpop.eup %1109 }
 0x1d7   : > { %v1112_v3 = vpop.eup %1111  ;;  %v688_v4 = vadd.f32 1.0, %v1110_v2  ;;  %s1037_s13 = sshll.u32 %s1255_s24, 9  ;;  %s1527_s15 = sshll.u32 %s1391_s7, 5 }
 0x1d8   : > { %v1114_v5 = vpop.eup %1113  ;;  %v690_v6 = vadd.f32 1.0, %v1112_v3  ;;  %s303_s14 = scalar_lea.vmem [#allocation5], %s1527_s15  ;;  %s1466_s8 = scalar_lea.hbm %s1519_s5, %s1037_s13 }
 0x1d9   : > { %v1116_v7 = vpop.eup %1115  ;;  %v689_v8 = vadd.f32 1.0, %v1114_v5  ;;  %1117 = vrcp.f32 %v688_v4  ;;  %s870_s16 = sshll.u32 %s303_s14, 4  ;;  %s848_s24 = scalar_lea.sflag [#allocation4], %s1391_s7  ;;  %s1468_s16 = int_to_ptr.vmem [resolvable:$true] %s870_s16 }
 0x1da   : > { %v691_v9 = vadd.f32 1.0, %v1116_v7  ;;  %1119 = vrcp.f32 %v690_v6  ;;  %s1179_s17 = scalar_lea.vmem %s1468_s16, 512  ;;  %s1269_s18 = smov [#allocation5]  }
 0x1db   : > { %1121 = vrcp.f32 %v689_v8  ;;  %p1180_p11 = scmp.ne.s32.totalorder %s1468_s16, %s1179_s17  ;;  %s1183_s19 = sshll.u32 %s1269_s18, 4  ;;  %s1184_s19 = int_to_ptr.vmem [resolvable:$false] %s1183_s19 }
 0x1dc   : > { %1123 = vrcp.f32 %v691_v9  ;;  %s1185_s9 = scalar_lea.vmem %s1184_s19, 1024  ;;  %p1186_p1 = scmp.lt.s32.totalorder %s1468_s16, %s1184_s19 }
 0x1dd   : > { %p1181_p12 = pnand %p1180_p11, %p1356_p9  ;;  %p1187_p2 = scmp.lt.s32.totalorder %s1185_s9, %s1179_s17 }
 0x1df   : > { %p1182_p0 = pneg %p1181_p12  ;;  %p1188_p3 = por %p1187_p2, %p1186_p1 }
 0x1e1   : > { %p1189_p5 = pnand %p1188_p3, %p1182_p0 }
 0x1e6   : > { %v1118_v10 = vpop.eup %1117 }
 0x1e7   : > { %v1120_v11 = vpop.eup %1119  ;;  %700 = vst [vmem:[%s303_s14] sm:$0xff] %v1118_v10 }
 0x1e8   : > { %v1122_v12 = vpop.eup %1121  ;;  %702 = vst [vmem:[%s303_s14 + $0x10] sm:$0xff] %v1120_v11 }
 0x1e9   : > { %v1124_v13 = vpop.eup %1123  ;;  %701 = vst [vmem:[%s303_s14 + $0x8] sm:$0xff] %v1122_v12 }
 0x1ea   : > { %703 = vst [vmem:[%s303_s14 + $0x18] sm:$0xff] %v1124_v13 }
 0x1eb   : > { %1192 = shalt.err (!%p1189_p5)
}
 0x1ec   : > { %s1193_s27 = scalar_lea.hbm %s1466_s8, 512  ;;  %s1197_s13 = scalar_lea.hbm %s1519_s5, 1024 }
 0x1ed   : > { %p1194_p6 = scmp.ne.s32.totalorder %s1466_s8, %s1193_s27  ;;  %p1198_p4 = scmp.lt.s32.totalorder %s1466_s8, %s1519_s5 }
 0x1ee   : > { %p1199_p13 = scmp.lt.s32.totalorder %s1197_s13, %s1193_s27 }
 0x1ef   : > { %p1195_p7 = pnand %p1194_p6, %p1356_p9 }
 0x1f0   : > { %p1200_p8 = por %p1199_p13, %p1198_p4 }
 0x1f1   : > { %p1196_p10 = pneg %p1195_p7 }
 0x1f3   : > { %p1201_p11 = pnand %p1200_p8, %p1196_p10 }
 0x1f5   : > { %1204 = shalt.err (!%p1201_p11)
}
 0x1f6   : > { %1040 = dma.vmem_to_hbm [thread:$0]  (%p1356_p9), %s1468_s16, 512, %s1466_s8, %s848_s24  }
 0x1f7 PF: > { %s897_s20 = sand.u32 1, %s1243_s21   ;;  %p1528_p12 = scmp.ne.s32.totalorder %s1525_s12, 0 }
 0x1f8   : > { %p1529_p0 = scmp.ge.s32.totalorder %s1263_s26, 2  ;;  %s898_s30 = scalar_lea.sflag [#allocation4], %s897_s20 }
 0x1fa   : > { %p1049_p1 = pnand %p1529_p0, %p1528_p12 }
 0x1fc   : > { %p1050_p2 = pneg %p1049_p1 }
 0x1fe   : > { %1234 = dma.done.wait (%p1050_p2), %s898_s30, 512  }
 0x1ff   : > { %1236 = vsyncadd (%p1050_p2), %s898_s30, 4294966784  ;;  %s907_s17 = scalar_lea.sflag [#allocation7], %s897_s20 }
 0x200   : > { %1238 = dma.done.wait (%p1050_p2), %s907_s17, 128  }
 0x201   : > { %1240 = vsyncadd (%p1050_p2), %s907_s17, 4294967168  ;;  %s26_s26 = sadd.s32 1, %s1263_s26   ;;  %s1530_s21 = smov %s1247_s22 }
 0x202   : > { %p23_p3 = scmp.ge.s32.totalorder %s26_s26, 4   ;;  %s1531_s22 = smov %s1251_s23 }
 0x203   : > { %s1532_s23 = smov %s1361_s11  ;;  %s1533_s24 = smov %s1259_s25 }
 0x204   : > { %s1534_s25 = smov %s1536_s29  ;;  %25 = sbr.rel (!%p23_p3) target bundleno = 8 (0x8), region = 106 }
 0x209   :  { %912 = vsyncpa [#allocation3], 1 }
 0x20a   :  { %914 = vsyncpa [#allocation3 + $0x1], 1 }
 0x20b   :  { %915 = vsyncpa [#allocation4], 1 }
 0x20c   :  { %917 = vsyncpa [#allocation4 + $0x1], 1 }
 0x20d   :  { %918 = vsyncpa [#allocation7], 1 }
 0x20e   :  { %920 = vsyncpa [#allocation7 + $0x1], 1 }

</bundles_post_ra>
